<compile_context>
chip_gen: v6e
topology: v6e:2x2x1
jax: 0.10.0
libtpu: 0.0.40
codegen_flags: <defaults>
</compile_context>

<pallas_src>
import jax
import jax.numpy as jnp
from jax.experimental import pallas as pl
from jax.experimental.pallas import tpu as pltpu

FILTERS = 32   # input features (matches module: filters = 32)
N_OUT = 5      # output logits (head_p out_features)

_SMALL_BATCH_THRESHOLD = 1024   # below this, plain XLA beats a Pallas dispatch
_MAX_TILE = 16384               # max rows per grid step (>=1 us DMA/step on v6e)


def _round_up(x, m):
    return ((x + m - 1) // m) * m


def linear_kernel(h_ref, wt_ref, o_ref):
    # h_ref:  [TB, F]   VMEM  (one batch tile, streamed & double-buffered)
    # wt_ref: [F, OUT]  VMEM  (W transposed, constant block -> stays resident)
    # o_ref:  [TB, OUT] VMEM
    o_ref[...] = jnp.dot(
        h_ref[...], wt_ref[...], preferred_element_type=jnp.float32
    ).astype(o_ref.dtype)


def prepare_weight(weight):
    """One-time conversion of the PyTorch-layout weight [N_OUT, FILTERS] into
    the kernel layout [FILTERS, N_OUT]. Call once, outside the hot path /
    outside any jit of the hot loop, and reuse the result."""
    assert weight.shape == (N_OUT, FILTERS)
    return jnp.asarray(weight).T


def lux_controller_forward(h_head, w_t, *, max_tile=_MAX_TILE,
                           small_batch_threshold=_SMALL_BATCH_THRESHOLD,
                           force_pallas=False):
    """h_head: [B, FILTERS]; w_t: [FILTERS, N_OUT] (from prepare_weight).
    Returns logits [B, N_OUT]."""
    B, F = h_head.shape
    assert F == FILTERS
    assert w_t.shape == (FILTERS, N_OUT)

    # Tiny-batch fast path: a standalone Pallas dispatch + DMA setup costs
    # several microseconds while the actual work at B~8 is <0.1 us.
    if B < small_batch_threshold and not force_pallas:
        return jnp.dot(
            h_head, w_t, preferred_element_type=jnp.float32
        ).astype(h_head.dtype)

    # Sublane packing: 8 rows for 32-bit dtypes, 16 for bf16.
    sub = 16 if h_head.dtype == jnp.bfloat16 else 8

    # Tile selection:
    #  * cap at max_tile rows so per-step DMA dwarfs the ~0.35 us step cost,
    #  * keep >= 2 grid steps so the "parallel" axis can use both v7x cores,
    #  * round up to the sublane count so the block shape is legal.
    tb = min(max_tile, _round_up(pl.cdiv(B, 2), sub))
    tb = max(tb, sub)
    grid = (pl.cdiv(B, tb),)

    # VMEM budget: input and output tiles are both lane-padded to 128 lanes
    # in VMEM and double-buffered -> ~4 * tb * 128 * itemsize bytes, plus the
    # tiny resident weight and compiler scratch headroom.
    itemsize = jnp.dtype(h_head.dtype).itemsize
    vmem_limit = int(max(4 * tb * 128 * itemsize + (4 << 20), 16 << 20))

    return pl.pallas_call(
        linear_kernel,
        out_shape=jax.ShapeDtypeStruct((B, N_OUT), h_head.dtype),
        grid_spec=pltpu.PrefetchScalarGridSpec(
            num_scalar_prefetch=0,
            grid=grid,
            in_specs=[
                # Streamed batch tiles of the activations (partial last block
                # allowed; undefined tail rows only hit masked output rows).
                pl.BlockSpec((tb, F), lambda i: (i, 0)),
                # Weight: same tiny block every iteration (stays resident).
                pl.BlockSpec((FILTERS, N_OUT), lambda i: (0, 0)),
            ],
            out_specs=pl.BlockSpec((tb, N_OUT), lambda i: (i, 0)),
        ),
        compiler_params=pltpu.CompilerParams(
            # Batch tiles are independent -> shard across v7x's 2 TensorCores.
            dimension_semantics=("parallel",),
            vmem_limit_bytes=vmem_limit,
        ),
    )(h_head, w_t)


if __name__ == "__main__":
    key = jax.random.PRNGKey(0)
    k_x, k_w = jax.random.split(key)

    batch = 8
    # Input encoded state h_head: [batch, 32]
    h_head = jax.random.normal(k_x, (batch, FILTERS), dtype=jnp.float32)

    # Deterministic synthetic weight for head_p: [5, 32] (PyTorch Linear layout,
    # Kaiming-uniform-like scale ~ 1/sqrt(fan_in)).
    bound = 1.0 / (FILTERS ** 0.5)
    weight = jax.random.uniform(
        k_w, (N_OUT, FILTERS), dtype=jnp.float32, minval=-bound, maxval=bound
    )

    # Hoisted, one-time weight layout conversion (reused across calls).
    w_t = prepare_weight(weight)

    ref_small = h_head @ weight.T

    # Tiny-batch path (XLA fast path -- the actual inference-time shape).
    out_fast = lux_controller_forward(h_head, w_t)
    jax.block_until_ready(out_fast)
    assert out_fast.shape == (batch, N_OUT)
    assert jnp.allclose(out_fast, ref_small, atol=1e-5, rtol=1e-5)

    # Force the Pallas kernel on the same tiny batch to exercise it directly.
    out_small = lux_controller_forward(h_head, w_t, force_pallas=True)
    jax.block_until_ready(out_small)
    assert out_small.shape == (batch, N_OUT)
    assert jnp.allclose(out_small, ref_small, atol=1e-5, rtol=1e-5)

    # Larger, non-tile-aligned batch: exercises the 2-step "parallel" grid with
    # a partial (masked) last block and no pad/slice round-trip.
    big_b = 5000
    h_big = jax.random.normal(jax.random.PRNGKey(1), (big_b, FILTERS), jnp.float32)
    out_big = lux_controller_forward(h_big, w_t)
    jax.block_until_ready(out_big)
    ref_big = h_big @ weight.T
    assert out_big.shape == (big_b, N_OUT)
    assert jnp.allclose(out_big, ref_big, atol=1e-4, rtol=1e-4)

    print("KERNEL_OK")
</pallas_src>

<mosaic_0001>
module attributes {stable_mosaic.version = 11 : i64} {
  func.func @linear_kernel(%arg0: i32, %arg1: memref<8x32xf32, #tpu.memory_space<vmem>>, %arg2: memref<32x5xf32, #tpu.memory_space<vmem>>, %arg3: memref<8x5xf32, #tpu.memory_space<vmem>>) attributes {dimension_semantics = [#tpu.dimension_semantics<parallel>], iteration_bounds = array<i64: 1>, scalar_prefetch = 0 : i64, scratch_operands = 0 : i64, tpu.core_type = #tpu.core_type<tc>, window_params = [{transform_indices = @transform_0, window_bounds = array<i64: 8, 32>}, {pipeline_mode = #tpu.pipeline_mode<synchronous>, transform_indices = @transform_1, window_bounds = array<i64: 32, 5>}, {transform_indices = @transform_2, window_bounds = array<i64: 8, 5>}]} {
    %c0 = arith.constant 0 : index
    %c0_0 = arith.constant 0 : index
    %0 = vector.load %arg1[%c0, %c0_0] : memref<8x32xf32, #tpu.memory_space<vmem>>, vector<8x32xf32>
    %c0_1 = arith.constant 0 : index
    %c0_2 = arith.constant 0 : index
    %1 = vector.load %arg2[%c0_1, %c0_2] : memref<32x5xf32, #tpu.memory_space<vmem>>, vector<32x5xf32>
    %cst = arith.constant dense<0.000000e+00> : vector<8x5xf32>
    %2 = tpu.matmul %0, %1, %cst {dimension_numbers = #tpu.dot_dimension_numbers<[1], [0], [0], [1], [0, 0, 1, 1], [], []>} : vector<8x32xf32>, vector<32x5xf32>, vector<8x5xf32> -> vector<8x5xf32>
    %c0_3 = arith.constant 0 : index
    %c0_4 = arith.constant 0 : index
    %3 = vector.load %arg3[%c0_3, %c0_4] : memref<8x5xf32, #tpu.memory_space<vmem>>, vector<8x5xf32>
    tpu.vector_store %arg3[%c0_3, %c0_4], %2 {strides = array<i32>} : memref<8x5xf32, #tpu.memory_space<vmem>>, vector<8x5xf32>,
    return
  }
  func.func @transform_0(%arg0: i32) -> (i32, i32) {
    %c0_i32 = arith.constant 0 : i32
    %c0_i32_0 = arith.constant 0 : i32
    return %arg0, %c0_i32 : i32, i32
  }
  func.func @transform_1(%arg0: i32) -> (i32, i32) {
    %c0_i32 = arith.constant 0 : i32
    %c0_i32_0 = arith.constant 0 : i32
    %c0_i32_1 = arith.constant 0 : i32
    return %c0_i32, %c0_i32_0 : i32, i32
  }
  func.func @transform_2(%arg0: i32) -> (i32, i32) {
    %c0_i32 = arith.constant 0 : i32
    %c0_i32_0 = arith.constant 0 : i32
    return %arg0, %c0_i32 : i32, i32
  }
}

</mosaic_0001>

<bundles_post_ra>
// kernel: tpu_custom_call.1
= control target key start
LH: loop header
LB: loop body
LE: loop exit
PB: predicated region body
PF: predicated region fallthrough
CT: control target
= control target key end

     0   :  { %v149_v1 = vmov 0.0   ;;  %vm150_vm0 = vmmov 0   ;;  %s185_s0 = inlined_call_operand.vmem [shape: f32[8,32], index: 0, kind: input, shape index: {}]   ;;  %s186_s1 = inlined_call_operand.vmem [shape: f32[32,5], index: 1, kind: input, shape index: {}]   ;;  %s187_s2 = inlined_call_operand.hbm [shape: f32[8,5], index: 2, kind: output, shape index: {}]  }
   0x1   :  { %v16_v0 = vld [vmem:[%s186_s1 + $0x18] sm:$0xff]  ;;  %113 = vmatprep.subr.mxu0 %v149_v1  ;;  %v15_v2 = vld [vmem:[%s186_s1 + $0x10] sm:$0xff]  ;;  %121 = vmatprep.mubr.msk.f32.mxu0 %vm150_vm0, %v149_v1 }
   0x2   :  { %7 = vsyncpa [#allocation3], 0  ;;  %114 = vmatpush3.msra.mxu0 %v16_v0  ;;  %v14_v3 = vld [vmem:[%s186_s1 + $0x8] sm:$0xff]  ;;  %v13_v4 = vld [vmem:[%s186_s1] sm:$0xff]  ;;  %vm17_vm1 = vcmask 261120   ;;  %s151_s19 = smov [#allocation2]  }
   0x3   :  { %115 = vmatprep.subr.mxu0 %v149_v1  ;;  %v12_v5 = vld [vmem:[%s185_s0] sm:$0xff]  ;;  %s99_s20 = sshll.u32 %s151_s19, 4  ;;  %vm91_vm2 = vcmask 39936   ;;  %s100_s20 = int_to_ptr.vmem [resolvable:$true] %s99_s20 }
   0x4   :  { %116 = vmatpush3.msra.mxu0 %v15_v2  ;;  %s127_s21 = scalar_lea.vmem %s100_s20, 128  ;;  %p132_p1 = scmp.lt.s32.totalorder %s100_s20, %s100_s20 }
   0x5   :  { %117 = vmatprep.subr.mxu0 %v149_v1  ;;  %p128_p0 = scmp.ne.s32.totalorder %s100_s20, %s127_s21  ;;  %p133_p2 = scmp.lt.s32.totalorder %s127_s21, %s127_s21 }
   0x6   :  { %118 = vmatpush3.msra.mxu0 %v14_v3 }
   0x7   :  { %119 = vmatprep.subr.mxu0 %v149_v1  ;;  %p134_p3 = por %p133_p2, %p132_p1 }
   0x8   :  { %120 = vmatpush3.msra.mxu0 %v13_v4 }
   0x9   :  { %122 = vmatmul.mubr.msk.f32.vlgmr.msra.gmra.mxu0 %vm17_vm1, %v12_v5  ;;  %p135_p4 = pnand %p134_p3, %p128_p0 }
  0xc9   :  { %v87_v6 = vpop.f32.mrf.mxu0 }
  0xca   :  { %92 = vst.msk [vmem:[#allocation2] sm:$0xff] %vm91_vm2, %v87_v6 }
  0xcb   :  { %v123_v7 = vpop.f32.mrf.mxu0 }
  0xcc   :  { %138 = shalt.err (!%p135_p4)
}
  0xcd   :  { %102 = dma.vmem_to_hbm [thread:$0]  %s100_s20, 128, %s187_s2, [#allocation3]  }
  0xce   :  { %147 = dma.done.wait [#allocation3], 128  }
  0xcf   :  { %148 = vsyncadd [#allocation3], 4294967168 }
  0xd0   :  { %106 = vsyncpa [#allocation3], 1 }

</bundles_post_ra>
